<compile_context>
chip_gen: v6e
topology: v6e:2x2x1
jax: 0.10.0
libtpu: 0.0.40
codegen_flags: <defaults>
</compile_context>

<pallas_src>
import functools

import jax
import jax.numpy as jnp
from jax.experimental import pallas as pl
from jax.experimental.pallas import tpu as pltpu

H1_DIM, H1_PAD = 250, 256   # first hidden layer, padded to a 128 multiple
H2_DIM, H2_PAD = 100, 128   # second hidden layer, padded (also the h2 output width)
OUT_PAD = 128               # lane-dense output width (out_dim <= 128 assumed)


def _round_up(n, m):
    return ((n + m - 1) // m) * m


def _tpu_generation():
    """Best-effort TPU generation (7 for v7x, 6 for v6e, 5 for v5e, ...)."""
    try:
        kind = jax.devices()[0].device_kind.lower()
    except Exception:
        return 6
    for g in (7, 6, 5, 4, 3, 2):
        if str(g) in kind:
            return g
    return 6


def _vmem_capacity_bytes(gen):
    try:
        return int(pltpu.get_tpu_info().vmem_capacity_bytes)
    except Exception:
        # v7x: 64 MiB per TensorCore; v5e/v6e: 128 MiB.  Unknown -> assume 64 MiB.
        return (128 << 20) if gen in (5, 6) else (64 << 20)


def mlp2_kernel(x_ref, w1_ref, b1_ref, w2_ref, b2_ref, w3_ref, b3_ref,
                y_ref, *h2_out):
    # Three MXU matmuls with f32 accumulation; bias-add / ReLU stay in f32
    # (v5e VPU has no bf16).  All tiles are lane/sublane-dense -> full vst/vld.
    x = x_ref[...]
    h1 = jnp.dot(x, w1_ref[...], preferred_element_type=jnp.float32) + b1_ref[...]
    h1 = jnp.maximum(h1, 0.0)
    h2 = jnp.dot(h1.astype(w2_ref.dtype), w2_ref[...],
                 preferred_element_type=jnp.float32) + b2_ref[...]
    h2 = jnp.maximum(h2, 0.0)
    y = jnp.dot(h2.astype(w3_ref.dtype), w3_ref[...],
                preferred_element_type=jnp.float32) + b3_ref[...]
    y_ref[...] = y.astype(y_ref.dtype)
    if h2_out:  # static Python branch: h2 writeback only if the caller wants it
        h2_out[0][...] = h2.astype(h2_out[0].dtype)


def prepare_params(params, *, use_bf16=False):
    """Pad weights/biases once so every in-kernel dim is (8,128)-friendly.

    params are stored as (in_features, out_features), i.e. transposed vs.
    PyTorch nn.Linear, so the kernel computes x @ W + b directly.
    Extra rows/cols are zero, so padded results equal the unpadded math.
    """
    w1, b1, w2, b2, w3, b3 = params
    in_dim = w1.shape[0]
    out_dim = w3.shape[1]
    assert out_dim <= OUT_PAD, "out_dim > 128 not handled by this padding scheme"
    in_pad = _round_up(in_dim, 8)   # dense sublane layout for w1 / dense K
    w_dtype = jnp.bfloat16 if use_bf16 else jnp.float32

    def pad2(a, shape, dtype):
        return jnp.zeros(shape, dtype).at[:a.shape[0], :a.shape[1]].set(a.astype(dtype))

    w1p = pad2(w1, (in_pad, H1_PAD), w_dtype)
    b1p = pad2(b1.reshape(1, -1), (1, H1_PAD), jnp.float32)
    w2p = pad2(w2, (H1_PAD, H2_PAD), w_dtype)
    b2p = pad2(b2.reshape(1, -1), (1, H2_PAD), jnp.float32)
    w3p = pad2(w3, (H2_PAD, OUT_PAD), w_dtype)
    b3p = pad2(b3.reshape(1, -1), (1, OUT_PAD), jnp.float32)
    return (w1p, b1p, w2p, b2p, w3p, b3p), in_dim, in_pad, out_dim


def _choose_tile_m(batch, in_pad, x_itemsize, return_h2, weight_bytes,
                   gen, vmem_budget, align):
    """Biggest batch tile that fits the VMEM budget, amortizes the ~0.35us/step
    pipeline overhead, and (on v7x) still yields >=2 tiles for the 2 TCs."""
    per_row = (2 * in_pad * x_itemsize                    # x block, double-buffered
               + 2 * OUT_PAD * 4                          # y block, double-buffered
               + (2 * H2_PAD * 4 if return_h2 else 0)     # h2 block, double-buffered
               + (H1_PAD + H2_PAD + OUT_PAD) * 4)         # in-kernel f32 temporaries
    avail = vmem_budget - 2 * weight_bytes - (2 << 20)    # weights double-buffered
    tile_m = max(align, avail // per_row)
    tile_m = min(tile_m, 2048 if gen >= 7 else 4096)
    batch_aligned = _round_up(batch, align)
    if gen >= 7 and batch_aligned >= 256:
        # keep at least 2 tiles so the "parallel" batch axis shards over both TCs
        tile_m = min(tile_m, _round_up(-(-batch_aligned // 2), align))
    tile_m = min(tile_m, batch_aligned)
    tile_m = max(align, (tile_m // align) * align)
    return int(tile_m)


def mlp2_forward(x, params, *, use_bf16=None, tile_m=None, return_h2=True,
                 unpad_outputs=True):
    """x: (batch, ...) — flattened to (batch, input_dim) like x.view(batch, -1).

    Returns (y_pred, h_2) matching the PyTorch module (h_2 is None when
    return_h2=False).  use_bf16=None auto-selects bf16 matmul operands on
    v6e/v7x and f32 elsewhere.
    """
    gen = _tpu_generation()
    if use_bf16 is None:
        use_bf16 = gen >= 6
    x_dtype = jnp.bfloat16 if use_bf16 else jnp.float32
    align = 16 if use_bf16 else 8

    batch = x.shape[0]
    x2d = x.reshape(batch, -1)
    (w1p, b1p, w2p, b2p, w3p, b3p), in_dim, in_pad, out_dim = prepare_params(
        params, use_bf16=use_bf16)
    assert x2d.shape[1] == in_dim
    weight_bytes = sum(int(a.size) * a.dtype.itemsize
                       for a in (w1p, b1p, w2p, b2p, w3p, b3p))

    capacity = _vmem_capacity_bytes(gen)
    vmem_limit = min(capacity * 3 // 4, 100 << 20)   # 96 MiB on v5e/v6e, 48 MiB on v7x

    if tile_m is None:
        tile_m = _choose_tile_m(batch, in_pad, jnp.dtype(x_dtype).itemsize,
                                return_h2, weight_bytes, gen, vmem_limit, align)
    num_tiles = -(-batch // tile_m)
    padded_batch = num_tiles * tile_m

    # Only copy/pad x when actually required; otherwise pass it straight through.
    x_in = x2d.astype(x_dtype)
    if padded_batch != batch or in_pad != in_dim:
        x_in = jnp.pad(x_in, ((0, padded_batch - batch), (0, in_pad - in_dim)))

    out_bytes = padded_batch * OUT_PAD * 4 + (padded_batch * H2_PAD * 4 if return_h2 else 0)
    cost = pl.CostEstimate(
        flops=2 * padded_batch * (in_pad * H1_PAD + H1_PAD * H2_PAD + H2_PAD * OUT_PAD),
        transcendentals=0,
        bytes_accessed=padded_batch * in_pad * jnp.dtype(x_dtype).itemsize
        + weight_bytes + out_bytes,
    )

    # Weights/biases: constant index_map -> VMEM-resident across all grid steps.
    # (pipeline_mode=pl.Buffered(1) would drop the redundant second VMEM copy of
    # each weight; skipped here since all padded weights total <1 MiB.)
    resident = lambda shape: pl.BlockSpec(shape, lambda i: (0, 0))

    out_shape = [jax.ShapeDtypeStruct((padded_batch, OUT_PAD), jnp.float32)]
    out_specs = [pl.BlockSpec((tile_m, OUT_PAD), lambda i: (i, 0))]
    if return_h2:
        out_shape.append(jax.ShapeDtypeStruct((padded_batch, H2_PAD), jnp.float32))
        out_specs.append(pl.BlockSpec((tile_m, H2_PAD), lambda i: (i, 0)))

    outs = pl.pallas_call(
        mlp2_kernel,
        out_shape=tuple(out_shape),
        grid=(num_tiles,),
        in_specs=[
            pl.BlockSpec((tile_m, in_pad), lambda i: (i, 0)),   # x, batch-tiled
            resident((in_pad, H1_PAD)),                         # w1
            resident((1, H1_PAD)),                              # b1
            resident((H1_PAD, H2_PAD)),                         # w2
            resident((1, H2_PAD)),                              # b2
            resident((H2_PAD, OUT_PAD)),                        # w3
            resident((1, OUT_PAD)),                             # b3
        ],
        out_specs=tuple(out_specs),
        compiler_params=pltpu.CompilerParams(
            dimension_semantics=("parallel",),
            vmem_limit_bytes=int(vmem_limit),
        ),
        cost_estimate=cost,
    )(x_in, w1p, b1p, w2p, b2p, w3p, b3p)

    y_pad = outs[0]
    h2_pad = outs[1] if return_h2 else None
    if not unpad_outputs:
        return y_pad, h2_pad
    y = y_pad[:batch, :out_dim]
    h2 = h2_pad[:batch, :H2_DIM] if return_h2 else None
    return y, h2


def init_params(key, input_dim, output_dim):
    """Deterministic synthetic params matching MLP_2's layer shapes
    (stored as (in, out) instead of PyTorch's (out, in))."""
    k1, k2, k3, k4, k5, k6 = jax.random.split(key, 6)
    w1 = jax.random.normal(k1, (input_dim, H1_DIM), jnp.float32) * 0.1
    b1 = jax.random.normal(k2, (1, H1_DIM), jnp.float32) * 0.1
    w2 = jax.random.normal(k3, (H1_DIM, H2_DIM), jnp.float32) * 0.1
    b2 = jax.random.normal(k4, (1, H2_DIM), jnp.float32) * 0.1
    w3 = jax.random.normal(k5, (H2_DIM, output_dim), jnp.float32) * 0.1
    b3 = jax.random.normal(k6, (1, output_dim), jnp.float32) * 0.1
    return (w1, b1, w2, b2, w3, b3)


if __name__ == "__main__":
    input_dim = 6     # e.g. IK pose input
    output_dim = 4    # e.g. joint angles
    batch = 8

    key = jax.random.PRNGKey(0)
    kx, kp = jax.random.split(key)
    x = jax.random.normal(kx, (batch, input_dim), jnp.float32)
    params = init_params(kp, input_dim, output_dim)

    # Pure-JAX reference of the same semantics (unpadded f32 math).
    w1, b1, w2, b2, w3, b3 = params
    h1_ref = jnp.maximum(x @ w1 + b1, 0.0)
    h2_ref = jnp.maximum(h1_ref @ w2 + b2, 0.0)
    y_ref = h2_ref @ w3 + b3

    # 1) Exact-precision path (f32 operands), both outputs, strict tolerance.
    fwd_f32 = jax.jit(functools.partial(mlp2_forward, use_bf16=False))
    y_pred, h_2 = fwd_f32(x, params)
    jax.block_until_ready((y_pred, h_2))
    assert y_pred.shape == (batch, output_dim) and h_2.shape == (batch, H2_DIM)
    assert jnp.allclose(y_pred, y_ref, atol=1e-5)
    assert jnp.allclose(h_2, h2_ref, atol=1e-5)

    # 2) Auto path (bf16 matmul operands on v6e/v7x), y-only output.
    fwd_auto = jax.jit(functools.partial(mlp2_forward, return_h2=False))
    y_auto, h2_none = fwd_auto(x, params)
    jax.block_until_ready(y_auto)
    assert h2_none is None
    assert y_auto.shape == (batch, output_dim)
    assert jnp.allclose(y_auto, y_ref, atol=5e-2, rtol=5e-2)

    print("KERNEL_OK")
</pallas_src>

<mosaic_0001>
module attributes {stable_mosaic.version = 11 : i64} {
  func.func @mlp2_kernel(%arg0: i32, %arg1: memref<8x8xf32, #tpu.memory_space<vmem>>, %arg2: memref<8x256xf32, #tpu.memory_space<vmem>>, %arg3: memref<1x256xf32, #tpu.memory_space<vmem>>, %arg4: memref<256x128xf32, #tpu.memory_space<vmem>>, %arg5: memref<1x128xf32, #tpu.memory_space<vmem>>, %arg6: memref<128x128xf32, #tpu.memory_space<vmem>>, %arg7: memref<1x128xf32, #tpu.memory_space<vmem>>, %arg8: memref<8x128xf32, #tpu.memory_space<vmem>>, %arg9: memref<8x128xf32, #tpu.memory_space<vmem>>) attributes {dimension_semantics = [#tpu.dimension_semantics<parallel>], iteration_bounds = array<i64: 1>, scalar_prefetch = 0 : i64, scratch_operands = 0 : i64, tpu.core_type = #tpu.core_type<tc>, window_params = [{transform_indices = @transform_0, window_bounds = array<i64: 8, 8>}, {pipeline_mode = #tpu.pipeline_mode<synchronous>, transform_indices = @transform_1, window_bounds = array<i64: 8, 256>}, {pipeline_mode = #tpu.pipeline_mode<synchronous>, transform_indices = @transform_2, window_bounds = array<i64: 1, 256>}, {pipeline_mode = #tpu.pipeline_mode<synchronous>, transform_indices = @transform_3, window_bounds = array<i64: 256, 128>}, {pipeline_mode = #tpu.pipeline_mode<synchronous>, transform_indices = @transform_4, window_bounds = array<i64: 1, 128>}, {pipeline_mode = #tpu.pipeline_mode<synchronous>, transform_indices = @transform_5, window_bounds = array<i64: 128, 128>}, {pipeline_mode = #tpu.pipeline_mode<synchronous>, transform_indices = @transform_6, window_bounds = array<i64: 1, 128>}, {transform_indices = @transform_7, window_bounds = array<i64: 8, 128>}, {transform_indices = @transform_8, window_bounds = array<i64: 8, 128>}]} {
    %c0 = arith.constant 0 : index
    %c0_0 = arith.constant 0 : index
    %0 = vector.load %arg1[%c0, %c0_0] : memref<8x8xf32, #tpu.memory_space<vmem>>, vector<8x8xf32>
    %c0_1 = arith.constant 0 : index
    %c0_2 = arith.constant 0 : index
    %1 = vector.load %arg2[%c0_1, %c0_2] : memref<8x256xf32, #tpu.memory_space<vmem>>, vector<8x256xf32>
    %cst = arith.constant dense<0.000000e+00> : vector<8x256xf32>
    %2 = tpu.matmul %0, %1, %cst {dimension_numbers = #tpu.dot_dimension_numbers<[1], [0], [0], [1], [0, 0, 1, 1], [], []>} : vector<8x8xf32>, vector<8x256xf32>, vector<8x256xf32> -> vector<8x256xf32>
    %c0_3 = arith.constant 0 : index
    %c0_4 = arith.constant 0 : index
    %3 = vector.load %arg3[%c0_3, %c0_4] : memref<1x256xf32, #tpu.memory_space<vmem>>, vector<1x256xf32>
    %4 = vector.broadcast %3 : vector<1x256xf32> to vector<8x256xf32>
    %5 = arith.addf %2, %4 : vector<8x256xf32>
    %cst_5 = arith.constant 0.000000e+00 : f32
    %6 = vector.broadcast %cst_5 : f32 to vector<8x256xf32>
    %7 = arith.maximumf %5, %6 : vector<8x256xf32>
    %c0_6 = arith.constant 0 : index
    %c0_7 = arith.constant 0 : index
    %8 = vector.load %arg4[%c0_6, %c0_7] : memref<256x128xf32, #tpu.memory_space<vmem>>, vector<256x128xf32>
    %cst_8 = arith.constant dense<0.000000e+00> : vector<8x128xf32>
    %9 = tpu.matmul %7, %8, %cst_8 {dimension_numbers = #tpu.dot_dimension_numbers<[1], [0], [0], [1], [0, 0, 1, 1], [], []>} : vector<8x256xf32>, vector<256x128xf32>, vector<8x128xf32> -> vector<8x128xf32>
    %c0_9 = arith.constant 0 : index
    %c0_10 = arith.constant 0 : index
    %10 = vector.load %arg5[%c0_9, %c0_10] : memref<1x128xf32, #tpu.memory_space<vmem>>, vector<1x128xf32>
    %11 = vector.broadcast %10 : vector<1x128xf32> to vector<8x128xf32>
    %12 = arith.addf %9, %11 : vector<8x128xf32>
    %cst_11 = arith.constant 0.000000e+00 : f32
    %13 = vector.broadcast %cst_11 : f32 to vector<8x128xf32>
    %14 = arith.maximumf %12, %13 : vector<8x128xf32>
    %c0_12 = arith.constant 0 : index
    %c0_13 = arith.constant 0 : index
    %15 = vector.load %arg6[%c0_12, %c0_13] : memref<128x128xf32, #tpu.memory_space<vmem>>, vector<128x128xf32>
    %cst_14 = arith.constant dense<0.000000e+00> : vector<8x128xf32>
    %16 = tpu.matmul %14, %15, %cst_14 {dimension_numbers = #tpu.dot_dimension_numbers<[1], [0], [0], [1], [0, 0, 1, 1], [], []>} : vector<8x128xf32>, vector<128x128xf32>, vector<8x128xf32> -> vector<8x128xf32>
    %c0_15 = arith.constant 0 : index
    %c0_16 = arith.constant 0 : index
    %17 = vector.load %arg7[%c0_15, %c0_16] : memref<1x128xf32, #tpu.memory_space<vmem>>, vector<1x128xf32>
    %18 = vector.broadcast %17 : vector<1x128xf32> to vector<8x128xf32>
    %19 = arith.addf %16, %18 : vector<8x128xf32>
    %c0_17 = arith.constant 0 : index
    %c0_18 = arith.constant 0 : index
    %20 = vector.load %arg8[%c0_17, %c0_18] : memref<8x128xf32, #tpu.memory_space<vmem>>, vector<8x128xf32>
    tpu.vector_store %arg8[%c0_17, %c0_18], %19 {strides = array<i32>} : memref<8x128xf32, #tpu.memory_space<vmem>>, vector<8x128xf32>,
    %c0_19 = arith.constant 0 : index
    %c0_20 = arith.constant 0 : index
    %21 = vector.load %arg9[%c0_19, %c0_20] : memref<8x128xf32, #tpu.memory_space<vmem>>, vector<8x128xf32>
    tpu.vector_store %arg9[%c0_19, %c0_20], %14 {strides = array<i32>} : memref<8x128xf32, #tpu.memory_space<vmem>>, vector<8x128xf32>,
    return
  }
  func.func @transform_0(%arg0: i32) -> (i32, i32) {
    %c0_i32 = arith.constant 0 : i32
    %c0_i32_0 = arith.constant 0 : i32
    return %arg0, %c0_i32 : i32, i32
  }
  func.func @transform_1(%arg0: i32) -> (i32, i32) {
    %c0_i32 = arith.constant 0 : i32
    %c0_i32_0 = arith.constant 0 : i32
    %c0_i32_1 = arith.constant 0 : i32
    return %c0_i32, %c0_i32_0 : i32, i32
  }
  func.func @transform_2(%arg0: i32) -> (i32, i32) {
    %c0_i32 = arith.constant 0 : i32
    %c0_i32_0 = arith.constant 0 : i32
    %c0_i32_1 = arith.constant 0 : i32
    return %c0_i32, %c0_i32_0 : i32, i32
  }
  func.func @transform_3(%arg0: i32) -> (i32, i32) {
    %c0_i32 = arith.constant 0 : i32
    %c0_i32_0 = arith.constant 0 : i32
    %c0_i32_1 = arith.constant 0 : i32
    return %c0_i32, %c0_i32_0 : i32, i32
  }
  func.func @transform_4(%arg0: i32) -> (i32, i32) {
    %c0_i32 = arith.constant 0 : i32
    %c0_i32_0 = arith.constant 0 : i32
    %c0_i32_1 = arith.constant 0 : i32
    return %c0_i32, %c0_i32_0 : i32, i32
  }
  func.func @transform_5(%arg0: i32) -> (i32, i32) {
    %c0_i32 = arith.constant 0 : i32
    %c0_i32_0 = arith.constant 0 : i32
    %c0_i32_1 = arith.constant 0 : i32
    return %c0_i32, %c0_i32_0 : i32, i32
  }
  func.func @transform_6(%arg0: i32) -> (i32, i32) {
    %c0_i32 = arith.constant 0 : i32
    %c0_i32_0 = arith.constant 0 : i32
    %c0_i32_1 = arith.constant 0 : i32
    return %c0_i32, %c0_i32_0 : i32, i32
  }
  func.func @transform_7(%arg0: i32) -> (i32, i32) {
    %c0_i32 = arith.constant 0 : i32
    %c0_i32_0 = arith.constant 0 : i32
    return %arg0, %c0_i32 : i32, i32
  }
  func.func @transform_8(%arg0: i32) -> (i32, i32) {
    %c0_i32 = arith.constant 0 : i32
    %c0_i32_0 = arith.constant 0 : i32
    return %arg0, %c0_i32 : i32, i32
  }
}

</mosaic_0001>

<bundles_post_ra>
// kernel: mlp2_forward.1
= control target key start
LH: loop header
LB: loop body
LE: loop exit
PB: predicated region body
PF: predicated region fallthrough
CT: control target
= control target key end

     0   :  { %vm44_vm0 = vcmask 64512   ;;  %v459_v3 = vmov 0.0   ;;  %s693_s0 = inlined_call_operand.vmem [shape: f32[8,8], index: 0, kind: input, shape index: {}]   ;;  %s694_s1 = inlined_call_operand.vmem [shape: f32[8,256], index: 1, kind: input, shape index: {}]   ;;  %s695_s2 = inlined_call_operand.vmem [shape: f32[1,256], index: 2, kind: input, shape index: {}]   ;;  %s696_s3 = inlined_call_operand.vmem [shape: f32[256,128], index: 3, kind: input, shape index: {}]   ;;  %s697_s4 = inlined_call_operand.vmem [shape: f32[1,128], index: 4, kind: input, shape index: {}]   ;;  %s698_s5 = inlined_call_operand.vmem [shape: f32[128,128], index: 5, kind: input, shape index: {}]   ;;  %s699_s6 = inlined_call_operand.vmem [shape: f32[1,128], index: 6, kind: input, shape index: {}]   ;;  %s700_s7 = inlined_call_operand.vmem [shape: f32[8,128], index: 7, kind: output, shape index: {0}]   ;;  %s701_s8 = inlined_call_operand.hbm [shape: f32[8,128], index: 8, kind: output, shape index: {1}]  }
   0x1   :  { %v31_v0 = vld [vmem:[%s694_s1 + $0x8] sm:$0xff]  ;;  %v30_v1 = vld [vmem:[%s694_s1] sm:$0xff]  ;;  %112 = vmatprep.mubr.f32.mxu0 %v459_v3  ;;  %v152_v4 = vld [vmem:[%s696_s3 + $0xf8] sm:$0xff] }
   0x2   :  { %v29_v2 = vld [vmem:[%s693_s0] sm:$0xff]  ;;  %78 = vmatprep.subr.mxu0 %v31_v0  ;;  %v136_v5 = vld [vmem:[%s696_s3 + $0x78] sm:$0xff]  ;;  %v151_v6 = vld [vmem:[%s696_s3 + $0xf0] sm:$0xff]  ;;  %347 = vmatprep.subr.mxu1 %v152_v4 }
   0x3   :  { %79 = vmatpush1.msra.mxu0 %v30_v1  ;;  %v135_v7 = vld [vmem:[%s696_s3 + $0x70] sm:$0xff]  ;;  %348 = vmatpush3.msra.mxu1 %v136_v5  ;;  %v150_v8 = vld [vmem:[%s696_s3 + $0xe8] sm:$0xff]  ;;  %v149_v10 = vld [vmem:[%s696_s3 + $0xe0] sm:$0xff] }
   0x4   :  { %344 = vmatmul.mubr.msk.f32.vlgmr.msra.gmra.mxu0 %vm44_vm0, %v29_v2  ;;  %349 = vmatprep.subr.mxu1 %v151_v6  ;;  %v134_v9 = vld [vmem:[%s696_s3 + $0x68] sm:$0xff]  ;;  %v133_v11 = vld [vmem:[%s696_s3 + $0x60] sm:$0xff]  ;;  %v148_v12 = vld [vmem:[%s696_s3 + $0xd8] sm:$0xff] }
   0x5   :  { %399 = vmatprep.subr.mxu0 %v459_v3  ;;  %350 = vmatpush3.msra.mxu1 %v135_v7  ;;  %v132_v13 = vld [vmem:[%s696_s3 + $0x58] sm:$0xff]  ;;  %v147_v14 = vld [vmem:[%s696_s3 + $0xd0] sm:$0xff] }
   0x6   :  { %351 = vmatprep.subr.mxu1 %v150_v8 }
   0x7   :  { %352 = vmatpush3.msra.mxu1 %v134_v9 }
   0x8   :  { %353 = vmatprep.subr.mxu1 %v149_v10 }
   0x9   :  { %354 = vmatpush3.msra.mxu1 %v133_v11 }
   0xa   :  { %14 = vsyncpa [#allocation3], 0  ;;  %355 = vmatprep.subr.mxu1 %v148_v12  ;;  %v131_v15 = vld [vmem:[%s696_s3 + $0x50] sm:$0xff]  ;;  %v146_v16 = vld [vmem:[%s696_s3 + $0xc8] sm:$0xff]  ;;  %v34_v47 = vlaneseq  ;;  %vm460_vm1 = vmmov 0   ;;  %s461_s12 = smov [#allocation2]  }
   0xb   :  { %356 = vmatpush3.msra.mxu1 %v132_v13  ;;  %v130_v17 = vld [vmem:[%s696_s3 + $0x48] sm:$0xff]  ;;  %v145_v18 = vld [vmem:[%s696_s3 + $0xc0] sm:$0xff]  ;;  %v144_v20 = vld [vmem:[%s696_s3 + $0xb8] sm:$0xff]  ;;  %431 = vmatprep.mubr.msk.f32.mxu0 %vm460_vm1, %v459_v3  ;;  %s334_s13 = sshll.u32 %s461_s12, 4  ;;  %s335_s13 = int_to_ptr.vmem [resolvable:$true] %s334_s13 }
   0xc   :  { %357 = vmatprep.subr.mxu1 %v147_v14  ;;  %v129_v19 = vld [vmem:[%s696_s3 + $0x40] sm:$0xff]  ;;  %v128_v21 = vld [vmem:[%s696_s3 + $0x38] sm:$0xff]  ;;  %v143_v22 = vld [vmem:[%s696_s3 + $0xb0] sm:$0xff]  ;;  %v35_v48 = vshrl.u32 %v34_v47, 7  ;;  %s437_s14 = scalar_lea.vmem %s335_s13, 128  ;;  %p442_p1 = scmp.lt.s32.totalorder %s335_s13, %s335_s13 }
   0xd   :  { %358 = vmatpush3.msra.mxu1 %v131_v15  ;;  %v127_v23 = vld [vmem:[%s696_s3 + $0x30] sm:$0xff]  ;;  %v142_v24 = vld [vmem:[%s696_s3 + $0xa8] sm:$0xff]  ;;  %v141_v26 = vld [vmem:[%s696_s3 + $0xa0] sm:$0xff]  ;;  %p438_p0 = scmp.ne.s32.totalorder %s335_s13, %s437_s14  ;;  %p443_p2 = scmp.lt.s32.totalorder %s437_s14, %s437_s14 }
   0xe   :  { %359 = vmatprep.subr.mxu1 %v146_v16  ;;  %v126_v25 = vld [vmem:[%s696_s3 + $0x28] sm:$0xff]  ;;  %v125_v27 = vld [vmem:[%s696_s3 + $0x20] sm:$0xff]  ;;  %v140_v28 = vld [vmem:[%s696_s3 + $0x98] sm:$0xff]  ;;  %v36_v49 = vsub.s32 0, %v35_v48  ;;  %v40_v51 = vsub.s32 1, %v35_v48 }
   0xf   :  { %360 = vmatpush3.msra.mxu1 %v130_v17  ;;  %v124_v29 = vld [vmem:[%s696_s3 + $0x18] sm:$0xff]  ;;  %v139_v30 = vld [vmem:[%s696_s3 + $0x90] sm:$0xff]  ;;  %v138_v32 = vld [vmem:[%s696_s3 + $0x88] sm:$0xff]  ;;  %p444_p3 = por %p443_p2, %p442_p1 }
  0x10   :  { %361 = vmatprep.subr.mxu1 %v145_v18  ;;  %v123_v31 = vld [vmem:[%s696_s3 + $0x10] sm:$0xff]  ;;  %v122_v33 = vld [vmem:[%s696_s3 + $0x8] sm:$0xff]  ;;  %v137_v34 = vld [vmem:[%s696_s3 + $0x80] sm:$0xff] }
  0x11   :  { %362 = vmatpush3.msra.mxu1 %v129_v19  ;;  %v121_v35 = vld [vmem:[%s696_s3] sm:$0xff]  ;;  %v246_v36 = vld [vmem:[%s698_s5 + $0x78] sm:$0xff]  ;;  %v245_v37 = vld [vmem:[%s698_s5 + $0x70] sm:$0xff]  ;;  %p445_p4 = pnand %p444_p3, %p438_p0 }
  0x12   :  { %363 = vmatprep.subr.mxu1 %v144_v20  ;;  %400 = vmatpush3.msra.mxu0 %v246_v36  ;;  %v244_v38 = vld [vmem:[%s698_s5 + $0x68] sm:$0xff]  ;;  %v243_v39 = vld [vmem:[%s698_s5 + $0x60] sm:$0xff]  ;;  %v242_v40 = vld [vmem:[%s698_s5 + $0x58] sm:$0xff] }
  0x13   :  { %364 = vmatpush3.msra.mxu1 %v128_v21  ;;  %401 = vmatprep.subr.mxu0 %v459_v3  ;;  %v241_v41 = vld [vmem:[%s698_s5 + $0x50] sm:$0xff]  ;;  %v240_v42 = vld [vmem:[%s698_s5 + $0x48] sm:$0xff]  ;;  %v239_v43 = vld [vmem:[%s698_s5 + $0x40] sm:$0xff] }
  0x14   :  { %365 = vmatprep.subr.mxu1 %v143_v22  ;;  %402 = vmatpush3.msra.mxu0 %v245_v37  ;;  %v238_v44 = vld [vmem:[%s698_s5 + $0x38] sm:$0xff]  ;;  %v237_v45 = vld [vmem:[%s698_s5 + $0x30] sm:$0xff]  ;;  %v236_v46 = vld [vmem:[%s698_s5 + $0x28] sm:$0xff] }
  0x15   :  { %366 = vmatpush3.msra.mxu1 %v127_v23  ;;  %403 = vmatprep.subr.mxu0 %v459_v3  ;;  %v32_v50 = vld [vmem:[%s695_s2] sm:$0x3]  ;;  %v234_v61 = vld [vmem:[%s698_s5 + $0x18] sm:$0xff]  ;;  %v233_v62 = vld [vmem:[%s698_s5 + $0x10] sm:$0xff] }
  0x16   :  { %367 = vmatprep.subr.mxu1 %v142_v24  ;;  %404 = vmatpush3.msra.mxu0 %v244_v38  ;;  %v37_v52 = vrot.slane %v32_v50, %v36_v49  ;;  %v41_v53 = vrot.slane %v32_v50, %v40_v51  ;;  %v235_v60 = vld [vmem:[%s698_s5 + $0x20] sm:$0xff]  ;;  %v232_v63 = vld [vmem:[%s698_s5 + $0x8] sm:$0xff] }
  0x17   :  { %368 = vmatpush3.msra.mxu1 %v126_v25  ;;  %405 = vmatprep.subr.mxu0 %v459_v3  ;;  %v231_v0 = vld [vmem:[%s698_s5] sm:$0xff] }
  0x18   :  { %369 = vmatprep.subr.mxu1 %v141_v26  ;;  %406 = vmatpush3.msra.mxu0 %v243_v39  ;;  %v345_v2 = vld [vmem:[%s697_s4] ss:$0 sm:$0xff] }
  0x19   :  { %370 = vmatpush3.msra.mxu1 %v125_v27  ;;  %407 = vmatprep.subr.mxu0 %v459_v3 }
  0x1a   :  { %371 = vmatprep.subr.mxu1 %v140_v28  ;;  %408 = vmatpush3.msra.mxu0 %v242_v40 }
  0x1b   :  { %372 = vmatpush3.msra.mxu1 %v124_v29  ;;  %409 = vmatprep.subr.mxu0 %v459_v3 }
  0x1c   :  { %373 = vmatprep.subr.mxu1 %v139_v30  ;;  %410 = vmatpush3.msra.mxu0 %v241_v41 }
  0x1d   :  { %374 = vmatpush3.msra.mxu1 %v123_v31  ;;  %411 = vmatprep.subr.mxu0 %v459_v3 }
  0x1e   :  { %375 = vmatprep.subr.mxu1 %v138_v32  ;;  %412 = vmatpush3.msra.mxu0 %v240_v42 }
  0x1f   :  { %376 = vmatpush3.msra.mxu1 %v122_v33  ;;  %413 = vmatprep.subr.mxu0 %v459_v3 }
  0x20   :  { %377 = vmatprep.subr.mxu1 %v137_v34  ;;  %414 = vmatpush3.msra.mxu0 %v239_v43 }
  0x21   :  { %378 = vmatpush3.msra.mxu1 %v121_v35  ;;  %415 = vmatprep.subr.mxu0 %v459_v3 }
  0x22   :  { %416 = vmatpush3.msra.mxu0 %v238_v44 }
  0x23   :  { %417 = vmatprep.subr.mxu0 %v459_v3 }
  0x24   :  { %418 = vmatpush3.msra.mxu0 %v237_v45 }
  0x25   :  { %419 = vmatprep.subr.mxu0 %v459_v3 }
  0x26   :  { %420 = vmatpush3.msra.mxu0 %v236_v46 }
  0x27   :  { %421 = vmatprep.subr.mxu0 %v459_v3 }
  0x28   :  { %422 = vmatpush3.msra.mxu0 %v235_v60 }
  0x29   :  { %423 = vmatprep.subr.mxu0 %v459_v3 }
  0x2a   :  { %424 = vmatpush3.msra.mxu0 %v234_v61 }
  0x2b   :  { %425 = vmatprep.subr.mxu0 %v459_v3 }
  0x2c   :  { %426 = vmatpush3.msra.mxu0 %v233_v62 }
  0x2d   :  { %427 = vmatprep.subr.mxu0 %v459_v3 }
  0x2e   :  { %428 = vmatpush3.msra.mxu0 %v232_v63 }
  0x2f   :  { %429 = vmatprep.subr.mxu0 %v459_v3 }
  0x30   :  { %430 = vmatpush3.msra.mxu0 %v231_v0 }
  0xc4   :  { %v114_v54 = vpop.f32.mrf.mxu0 }
  0xc5   :  { %v115_v55 = vadd.f32 %v114_v54, %v37_v52 }
  0xc6   :  { %v116_v56 = vpop.f32.mrf.mxu0 }
  0xc7   :  { %v117_v57 = vadd.f32 %v116_v56, %v41_v53  ;;  %v119_v59 = vmax.f32 %v115_v55, 0.0 }
  0xc9   :  { %v120_v58 = vmax.f32 %v117_v57, 0.0 }
  0xcb   :  { %224 = vmatprep.mubr.f32.mxu1 %v120_v58 }
  0xcc   :  { %225 = vmatmul.mubr.f32.vlgmr.msra.gmra.mxu1 %v119_v59 }
 0x18c   :  { %v379_v1 = vpop.f32.mrf.mxu1 }
 0x18e   :  { %v380_v4 = vpop.f32.mrf.mxu1 }
 0x18f   :  { %v381_v5 = vadd.f32 %v380_v4, %v379_v1 }
 0x191   :  { %v227_v6 = vadd.f32 %v381_v5, %v345_v2 }
 0x193   :  { %v230_v7 = vmax.f32 %v227_v6, 0.0 }
 0x195   :  { %325 = vst [vmem:[#allocation2] sm:$0xff] %v230_v7  ;;  %432 = vmatmul.mubr.f32.vlgmr.msra.gmra.mxu0 %v230_v7 }
 0x196   :  { %448 = shalt.err (!%p445_p4)
}
 0x197   :  { %337 = dma.vmem_to_hbm [thread:$0]  %s335_s13, 128, %s701_s8, [#allocation3]   ;;  %v346_v3 = vld [vmem:[%s699_s6] ss:$0 sm:$0xff] }
 0x255   :  { %v320_v8 = vpop.f32.mrf.mxu0 }
 0x256   :  { %v321_v9 = vadd.f32 %v346_v3, %v320_v8 }
 0x257   :  { %v433_v10 = vpop.f32.mrf.mxu0 }
 0x258   :  { %324 = vst [vmem:[%s700_s7] sm:$0xff] %v321_v9 }
 0x259   :  { %457 = dma.done.wait [#allocation3], 128  }
 0x25a   :  { %458 = vsyncadd [#allocation3], 4294967168 }
 0x25b   :  { %343 = vsyncpa [#allocation3], 1 }

</bundles_post_ra>
